<compile_context>
chip_gen: v7x
topology: tpu7x:2x2x1
jax: 0.10.0
libtpu: 0.0.40
codegen_flags: <defaults>
</compile_context>

<pallas_src>
import functools

import jax
import jax.numpy as jnp
from jax.experimental import pallas as pl
from jax.experimental.pallas import tpu as pltpu


# ----------------------------------------------------------------------------
# Kernels: one batch tile -> full-width output tile [features | identity x].
# All epilogue math in f32; only the final store casts to the output dtype.
# ----------------------------------------------------------------------------
def _activate(feats, activation):
    if activation == "swish":
        return feats * jax.nn.sigmoid(feats)      # beta = 1.0, EUP sigmoid
    elif activation == "relu":
        return jnp.maximum(feats, 0.0)
    else:
        raise RuntimeError("activation fn {} not supported".format(activation))


def _densenet_kernel_plain(x_ref, w_ref, b_ref, out_ref, *, output_dim,
                           activation):
    x = x_ref[...]
    feats = jnp.dot(x, w_ref[...], preferred_element_type=jnp.float32)
    feats = feats + b_ref[...]                          # (tb, N) + (1, N), f32
    feats = _activate(feats, activation)
    out_ref[:, :output_dim] = feats.astype(out_ref.dtype)
    out_ref[:, output_dim:] = x.astype(out_ref.dtype)   # identity concat


def _densenet_kernel_ln(x_ref, w_ref, b_ref, g_ref, beta_ref, out_ref, *,
                        output_dim, activation, eps):
    x = x_ref[...]
    feats = jnp.dot(x, w_ref[...], preferred_element_type=jnp.float32)
    feats = feats + b_ref[...]
    # LayerNorm over the feature dim (nn.LayerNorm(output_dim)), f32 math.
    # One-pass statistics: var = E[x^2] - mu^2 (one fewer XLU reduce).
    mu = jnp.mean(feats, axis=-1, keepdims=True)
    mean_sq = jnp.mean(feats * feats, axis=-1, keepdims=True)
    var = jnp.maximum(mean_sq - mu * mu, 0.0)
    feats = (feats - mu) * jax.lax.rsqrt(var + eps)
    feats = feats * g_ref[...] + beta_ref[...]
    feats = _activate(feats, activation)
    out_ref[:, :output_dim] = feats.astype(out_ref.dtype)
    out_ref[:, output_dim:] = x.astype(out_ref.dtype)   # identity concat


# ----------------------------------------------------------------------------
# Tiling helpers / wrapper
# ----------------------------------------------------------------------------
def _round_up(v, m):
    return ((v + m - 1) // m) * m


def _pick_batch_tile(batch, input_dim, output_dim, itemsize):
    """Largest sublane-aligned batch tile that fits a VMEM budget.

    Uses a lane-padded estimate: a (TB, d) tile occupies TB * round_up(d,128)
    * itemsize bytes in VMEM, and both the input tile and the full-width
    output tile are double-buffered by the BlockSpec pipeline.
    Generation-aware: smaller cap on v7x (64 MiB physical VMEM), and always
    at least 2 grid steps so the 'parallel' axis can shard across v7x's two
    TensorCores.
    """
    out_width = output_dim + input_dim
    padded_in = _round_up(input_dim, 128)
    padded_out = _round_up(out_width, 128)
    per_row = 2 * (padded_in + padded_out) * itemsize   # 2x double-buffering

    try:
        vmem_cap = pltpu.get_tpu_info().vmem_capacity_bytes
    except Exception:
        vmem_cap = 128 * 1024 * 1024
    if vmem_cap <= 64 * 1024 * 1024:      # v7x-class: less VMEM, faster HBM
        budget_bytes = 16 * 1024 * 1024
        row_cap = 8192
    else:                                  # v5e / v6e
        budget_bytes = 24 * 1024 * 1024
        row_cap = 16384

    tb = budget_bytes // max(per_row, 1)
    tb = min(tb, row_cap)
    # Guarantee >= 2 grid steps (megacore sharding on v7x; cheap elsewhere).
    tb = min(tb, _round_up((batch + 1) // 2, 8))
    tb = min(tb, _round_up(batch, 8))
    tb = max(8, (tb // 8) * 8)
    return tb


def densenet_block(x, w, b, gamma=None, beta=None, *, layernorm=False,
                   activation="swish", eps=1e-5, mxu_bf16=False, block_b=None):
    """Pallas forward for DensenetBlock.

    Args:
      x: (B, input_dim) float32
      w: (input_dim, output_dim) float32 (already transposed vs. torch Linear)
      b: (output_dim,) float32
      gamma, beta: (output_dim,) LayerNorm affine params (only if layernorm)
      activation: 'swish' (default) or 'relu'
      mxu_bf16: store/read x, w and the output as bf16 (f32 accumulate +
        f32 epilogue) — halves activation HBM bytes on this mem-bound kernel.
      block_b: optional batch-tile override (multiple of 8)
    Returns:
      (B, output_dim + input_dim) == concat([features, x], dim=1);
      dtype is bf16 when mxu_bf16 else x.dtype.
    """
    B, input_dim = x.shape
    k_dim, output_dim = w.shape
    assert k_dim == input_dim
    out_width = output_dim + input_dim

    if mxu_bf16:
        x = x.astype(jnp.bfloat16)
        w = w.astype(jnp.bfloat16)
    out_dtype = x.dtype

    itemsize = x.dtype.itemsize
    tb = block_b if block_b is not None else _pick_batch_tile(
        B, input_dim, output_dim, itemsize)
    tb = max(8, (min(tb, _round_up(B, 8)) // 8) * 8)
    grid = (pl.cdiv(B, tb),)

    b2 = b.reshape(1, output_dim).astype(jnp.float32)

    # x / out tiles stream over the batch grid; params stay resident (block 0).
    in_specs = [
        pl.BlockSpec((tb, input_dim), lambda i: (i, 0)),
        pl.BlockSpec((input_dim, output_dim), lambda i: (0, 0)),
        pl.BlockSpec((1, output_dim), lambda i: (0, 0)),
    ]
    operands = [x, w, b2]

    if layernorm:
        g2 = gamma.reshape(1, output_dim).astype(jnp.float32)
        beta2 = beta.reshape(1, output_dim).astype(jnp.float32)
        in_specs += [pl.BlockSpec((1, output_dim), lambda i: (0, 0)),
                     pl.BlockSpec((1, output_dim), lambda i: (0, 0))]
        operands += [g2, beta2]
        kernel = functools.partial(_densenet_kernel_ln, output_dim=output_dim,
                                   activation=activation, eps=eps)
    else:
        kernel = functools.partial(_densenet_kernel_plain,
                                   output_dim=output_dim,
                                   activation=activation)

    # Full-width output block: last dim equals the full array width, so the
    # (8,128) constraint is satisfied; the identity columns are written in
    # the kernel (no wrapper-side concat pass).
    out_specs = pl.BlockSpec((tb, out_width), lambda i: (i, 0))

    bytes_accessed = (x.size * x.dtype.itemsize
                      + sum(int(op.size) * op.dtype.itemsize
                            for op in operands[1:])
                      + B * out_width * jnp.dtype(out_dtype).itemsize)
    cost = pl.CostEstimate(flops=2 * B * input_dim * output_dim,
                           transcendentals=B * output_dim,
                           bytes_accessed=int(bytes_accessed))

    return pl.pallas_call(
        kernel,
        out_shape=jax.ShapeDtypeStruct((B, out_width), out_dtype),
        grid=grid,
        in_specs=in_specs,
        out_specs=out_specs,
        compiler_params=pltpu.CompilerParams(
            dimension_semantics=("parallel",),
            vmem_limit_bytes=32 * 1024 * 1024,
        ),
        cost_estimate=cost,
    )(*operands)


# ----------------------------------------------------------------------------
# Pure-JAX reference
# ----------------------------------------------------------------------------
def densenet_block_ref(x, w, b, gamma=None, beta=None, *, layernorm=False,
                       activation="swish", eps=1e-5):
    feats = x @ w + b
    if layernorm:
        mu = jnp.mean(feats, axis=-1, keepdims=True)
        var = jnp.mean(jnp.square(feats - mu), axis=-1, keepdims=True)
        feats = (feats - mu) / jnp.sqrt(var + eps)
        feats = feats * gamma + beta
    if activation == "swish":
        feats = feats * jax.nn.sigmoid(feats)
    else:
        feats = jnp.maximum(feats, 0.0)
    return jnp.concatenate([feats, x], axis=1)


if __name__ == "__main__":
    # Module-consistent small shapes: input_dim=32 -> output_dim=40 (default),
    # batch=64 so the batch grid/pipeline is actually exercised.
    B, input_dim, output_dim = 64, 32, 40

    key = jax.random.PRNGKey(0)
    kx, kw, kb, kg, kbeta = jax.random.split(key, 5)

    x = jax.random.normal(kx, (B, input_dim), dtype=jnp.float32)
    w = jax.random.normal(kw, (input_dim, output_dim), dtype=jnp.float32) * 0.1
    b = jax.random.normal(kb, (output_dim,), dtype=jnp.float32) * 0.1
    gamma = 1.0 + 0.05 * jax.random.normal(kg, (output_dim,), dtype=jnp.float32)
    beta = 0.05 * jax.random.normal(kbeta, (output_dim,), dtype=jnp.float32)

    ref = densenet_block_ref(x, w, b, layernorm=False)

    # 1) Default module config (layernorm=False, swish); small forced tile so
    #    the grid has multiple steps (grid=(4,)).
    out = jax.block_until_ready(densenet_block(x, w, b, layernorm=False,
                                               block_b=16))
    assert out.shape == (B, output_dim + input_dim)
    assert jnp.allclose(out, ref, atol=1e-5, rtol=1e-5)

    # 2) Auto tile selection (>= 2 grid steps) + layernorm=True path.
    out_ln = jax.block_until_ready(
        densenet_block(x, w, b, gamma, beta, layernorm=True))
    ref_ln = densenet_block_ref(x, w, b, gamma, beta, layernorm=True)
    assert jnp.allclose(out_ln, ref_ln, atol=1e-4, rtol=1e-4)

    # 3) relu activation path.
    out_relu = jax.block_until_ready(
        densenet_block(x, w, b, layernorm=False, activation="relu"))
    ref_relu = densenet_block_ref(x, w, b, layernorm=False, activation="relu")
    assert jnp.allclose(out_relu, ref_relu, atol=1e-5, rtol=1e-5)

    # 4) bf16 activation storage (f32 accumulate / epilogue), bf16 output;
    #    looser tolerance vs. the f32 reference.
    out_bf16 = jax.block_until_ready(
        densenet_block(x, w, b, layernorm=False, mxu_bf16=True))
    assert out_bf16.dtype == jnp.bfloat16
    assert jnp.allclose(out_bf16.astype(jnp.float32), ref, atol=1e-1, rtol=1e-1)

    print("KERNEL_OK")
</pallas_src>

<mosaic_0001>
module attributes {stable_mosaic.version = 11 : i64} {
  func.func @_densenet_kernel_plain(%arg0: i32, %arg1: memref<16x32xf32, #tpu.memory_space<vmem>>, %arg2: memref<32x40xf32, #tpu.memory_space<vmem>>, %arg3: memref<1x40xf32, #tpu.memory_space<vmem>>, %arg4: memref<16x72xf32, #tpu.memory_space<vmem>>) attributes {dimension_semantics = [#tpu.dimension_semantics<parallel>], iteration_bounds = array<i64: 4>, scalar_prefetch = 0 : i64, scratch_operands = 0 : i64, tpu.core_type = #tpu.core_type<tc>, window_params = [{transform_indices = @transform_0, window_bounds = array<i64: 16, 32>}, {pipeline_mode = #tpu.pipeline_mode<synchronous>, transform_indices = @transform_1, window_bounds = array<i64: 32, 40>}, {pipeline_mode = #tpu.pipeline_mode<synchronous>, transform_indices = @transform_2, window_bounds = array<i64: 1, 40>}, {transform_indices = @transform_3, window_bounds = array<i64: 16, 72>}]} {
    %c0 = arith.constant 0 : index
    %c0_0 = arith.constant 0 : index
    %0 = vector.load %arg1[%c0, %c0_0] : memref<16x32xf32, #tpu.memory_space<vmem>>, vector<16x32xf32>
    %c0_1 = arith.constant 0 : index
    %c0_2 = arith.constant 0 : index
    %1 = vector.load %arg2[%c0_1, %c0_2] : memref<32x40xf32, #tpu.memory_space<vmem>>, vector<32x40xf32>
    %cst = arith.constant dense<0.000000e+00> : vector<16x40xf32>
    %2 = tpu.matmul %0, %1, %cst {dimension_numbers = #tpu.dot_dimension_numbers<[1], [0], [0], [1], [0, 0, 1, 1], [], []>} : vector<16x32xf32>, vector<32x40xf32>, vector<16x40xf32> -> vector<16x40xf32>
    %c0_3 = arith.constant 0 : index
    %c0_4 = arith.constant 0 : index
    %3 = vector.load %arg3[%c0_3, %c0_4] : memref<1x40xf32, #tpu.memory_space<vmem>>, vector<1x40xf32>
    %4 = vector.broadcast %3 : vector<1x40xf32> to vector<16x40xf32>
    %5 = arith.addf %2, %4 : vector<16x40xf32>
    %6 = arith.negf %5 : vector<16x40xf32>
    %7 = math.exp %6 : vector<16x40xf32>
    %cst_5 = arith.constant 1.000000e+00 : f32
    %8 = vector.broadcast %cst_5 : f32 to vector<16x40xf32>
    %9 = arith.addf %8, %7 : vector<16x40xf32>
    %10 = arith.divf %8, %9 : vector<16x40xf32>
    %11 = arith.mulf %5, %10 : vector<16x40xf32>
    %c0_6 = arith.constant 0 : index
    %c0_7 = arith.constant 0 : index
    %12 = vector.load %arg4[%c0_6, %c0_7] : memref<16x72xf32, #tpu.memory_space<vmem>>, vector<16x40xf32>
    tpu.vector_store %arg4[%c0_6, %c0_7], %11 {strides = array<i32>} : memref<16x72xf32, #tpu.memory_space<vmem>>, vector<16x40xf32>,
    %c0_8 = arith.constant 0 : index
    %c40 = arith.constant 40 : index
    %13 = vector.load %arg4[%c0_8, %c40] : memref<16x72xf32, #tpu.memory_space<vmem>>, vector<16x32xf32>
    tpu.vector_store %arg4[%c0_8, %c40], %0 {strides = array<i32>} : memref<16x72xf32, #tpu.memory_space<vmem>>, vector<16x32xf32>,
    return
  }
  func.func @transform_0(%arg0: i32) -> (i32, i32) {
    %c0_i32 = arith.constant 0 : i32
    %c0_i32_0 = arith.constant 0 : i32
    return %arg0, %c0_i32 : i32, i32
  }
  func.func @transform_1(%arg0: i32) -> (i32, i32) {
    %c0_i32 = arith.constant 0 : i32
    %c0_i32_0 = arith.constant 0 : i32
    %c0_i32_1 = arith.constant 0 : i32
    return %c0_i32, %c0_i32_0 : i32, i32
  }
  func.func @transform_2(%arg0: i32) -> (i32, i32) {
    %c0_i32 = arith.constant 0 : i32
    %c0_i32_0 = arith.constant 0 : i32
    %c0_i32_1 = arith.constant 0 : i32
    return %c0_i32, %c0_i32_0 : i32, i32
  }
  func.func @transform_3(%arg0: i32) -> (i32, i32) {
    %c0_i32 = arith.constant 0 : i32
    %c0_i32_0 = arith.constant 0 : i32
    return %arg0, %c0_i32 : i32, i32
  }
}

</mosaic_0001>

<bundles_post_ra>
// kernel: tpu_custom_call.1
= control target key start
LH: loop header
LB: loop body
LE: loop exit
PB: predicated region body
PF: predicated region fallthrough
CT: control target
= control target key end

     0   :  { %8 = vsyncpa [#allocation3], 0  ;;  %s667_s0 = inlined_call_operand.vmem [shape: f32[64,32], index: 0, kind: input, shape index: {}]   ;;  %s668_s1 = inlined_call_operand.vmem [shape: f32[32,40], index: 1, kind: input, shape index: {}]   ;;  %s669_s2 = inlined_call_operand.vmem [shape: f32[1,40], index: 2, kind: input, shape index: {}]   ;;  %s670_s3 = inlined_call_operand.hbm [shape: f32[64,72], index: 3, kind: output, shape index: {}]  }
   0x1   :  { %10 = vsyncpa [#allocation3 + $0x1], 0  ;;  %s550_s12 = smov 0   ;;  %s552_s13 = smov 0  }
   0x2   :  { %s554_s14 = smov 0   ;;  %s556_s15 = smov 0  }
   0x3 LB: > { %s571_s16 = sadd.s32 4294967295, %s524_s15   ;;  %s369_s17 = sadd.s32 4294967294, %s524_s15   ;;  %s524_s15 = sphi %s556_s15, %s676_s15   ;;  %s520_s14 = sphi %s554_s14, %s675_s14   ;;  %s516_s13 = sphi %s552_s13, %s674_s13   ;;  %s512_s12 = sphi %s550_s12, %s673_s12  }
   0x4   : > { %s575_s18 = sadd.s32 1, %s524_s15   ;;  %s91_s19 = sadd.s32 1, %s520_s14 }
   0x5   : > { %s88_s20 = ssub.s32 %s524_s15, %s575_s18  ;;  %p101_p0 = scmp.ne.s32.totalorder %s520_s14, %s516_s13 }
   0x6   : > { %p89_p1 = scmp.eq.s32.totalorder %s88_s20, 0  ;;  %p102_p2 = scmp.eq.s32.totalorder %s571_s16, 3 }
   0x7   : > { %p107_p3 = scmp.ne.s32.totalorder %s516_s13, %s512_s12  ;;  %p108_p4 = scmp.eq.s32.totalorder %s369_s17, 3 }
   0x8   : > { %s586_s21 = scalar_select %p89_p1, %s520_s14, %s91_s19  }
   0x9   : > { %p588_p5 = por %p102_p2, %p101_p0  ;;  %p592_p6 = por %p108_p4, %p107_p3 }
   0xa   : > { %p372_p7 = scmp.ge.s32.totalorder %s524_s15, 1  ;;  %p141_p8 = scmp.lt.s32.totalorder %s524_s15, 5 }
   0xc   : > { %p142_p9 = pnand %p372_p7, %p141_p8 }
   0xd   : > { %v174_v0 = vld [vmem:[%s668_s1] sm:$0xff] (!%p142_p9)  ;;  %v175_v1 = vld [vmem:[%s668_s1 + $0x8] sm:$0xff] (!%p142_p9)  ;;  %v176_v2 = vld [vmem:[%s668_s1 + $0x10] sm:$0xff] (!%p142_p9)  ;;  %s374_s30 = sshll.u32 (!%p142_p9), %s571_s16, 1  ;;  %vm185_vm0 = vcmask (!%p142_p9), 261120   ;;  %s526_s10 = smov (!%p142_p9), 40  }
   0xe   : > { %145 = sbr.rel (%p142_p9) target bundleno = 285 (0x11d), region = 32  ;;  %v404_v3 = vpack.c.bf16 (!%p142_p9), %v175_v1, %v174_v0  ;;  %v177_v4 = vld [vmem:[%s668_s1 + $0x18] sm:$0xff] (!%p142_p9)  ;;  %p166_p10 = scmp.lt.s32.totalorder (!%p142_p9), %s374_s30, 7  ;;  %v376_v8 = vld [vmem:[%s669_s2] ss:$0 sm:$0xff] (!%p142_p9)  ;;  %vm281_vm1 = vcmask (!%p142_p9), 326656  }
   0xf   : > { %v408_v5 = vpack.c.bf16 (!%p142_p9), %v177_v4, %v176_v2  ;;  %s162_s19 = sand.u32 (!%p142_p9), 1, %s516_s13   ;;  %s386_s24 = sshll.u32 (!%p142_p9), %s571_s16, 8  ;;  %vm290_vm2 = vcmask (!%p142_p9), 589120  }
  0x10   : > { %405 = vmatprep.subr.bf16.mxu0 (!%p142_p9), %v404_v3  ;;  %s373_s20 = sshll.u32 (!%p142_p9), %s162_s19, 4  ;;  %s622_s29 = scalar_lea.hbm (!%p142_p9), %s670_s3, %s386_s24 }
  0x11   : > { %407 = vmatpush3.bf16.msra.mxu0 (!%p142_p9), %v404_v3  ;;  %s164_s25 = scalar_lea.vmem (!%p142_p9), [#allocation2], %s373_s20  ;;  %s626_s16 = scalar_lea.sflag (!%p142_p9), [#allocation3], %s162_s19 }
  0x12   : > { %409 = vmatprep.subr.bf16.mxu0 (!%p142_p9), %v408_v5  ;;  %s307_s26 = sshll.u32 (!%p142_p9), %s164_s25, 4  ;;  %s527_s4 = smov (!%p142_p9), [#allocation2]   ;;  %s624_s26 = int_to_ptr.vmem [resolvable:$true] %s307_s26 }
  0x13   : > { %s466_s5 = sshll.u32 (!%p142_p9), %s527_s4, 4  ;;  %s467_s5 = int_to_ptr.vmem [resolvable:$false] %s466_s5 }
  0x14   : > { %p469_p0 = scmp.lt.s32.totalorder (!%p142_p9), %s624_s26, %s467_s5 }
  0x15   : > { %s678_s30 = smov (!%p166_p10, %s374_s30), 7  ;;  %411 = vmatpush3.bf16.msra.mxu0 %v408_v5 }
  0x16   : > { %s375_s6 = sshll.u32 %s678_s30, 3  ;;  %s462_s30 = scalar_lea.vmem %s624_s26, 256 }
  0x17   : > { %s169_s9 = scalar_lea.vmem %s667_s0, %s375_s6  ;;  %p463_p11 = scmp.ne.s32.totalorder %s624_s26, %s462_s30 }
  0x18   : > { %v172_v6 = vld [vmem:[%s169_s9] sm:$0xff]  ;;  %v173_v7 = vld [vmem:[%s169_s9 + $0x8] sm:$0xff]  ;;  %s468_s6 = scalar_lea.vmem %s467_s5, 512 }
  0x19   : > { %401 = vmatprep.mubr.msk.f32.mxu0 %vm185_vm0, %v172_v6  ;;  %284 = vrot.lane.b32.xlu0 %v172_v6, %s526_s10  ;;  %p464_p12 = pnand %p463_p11, %p588_p5  ;;  %p470_p1 = scmp.lt.s32.totalorder %s468_s6, %s462_s30 }
  0x1a   : > { %402 = vmatmul.mubr.msk.f32.vlgmr.msra.gmra.mrb[0].mxu0 %vm185_vm0, %v173_v7 }
  0x1b   : > { %p465_p13 = pneg %p464_p12  ;;  %p471_p2 = por %p470_p1, %p469_p0 }
  0x1d   : > { %286 = vrot.lane.b32.xlu0 %v173_v7, %s526_s10  ;;  %p472_p3 = pnand %p471_p2, %p465_p13 }
  0x8b   : > { %v285_v19 = vpop.permute.xlu0 %284 }
  0x8f   : > { %v287_v23 = vpop.permute.xlu0 %286 }
  0xed   : > { %v403_v9 = vpop.f32.mrb[0].mxu0 }
  0xee   : > { %v264_v10 = vadd.f32 %v403_v9, %v376_v8  ;;  %v258_v11 = vpop.f32.mrb[1].mxu0 }
  0xef   : > { %v259_v12 = vadd.f32 %v376_v8, %v258_v11 }
  0xf0   : > { %v380_v13 = vmul.f32 -1.442695, %v264_v10 }
  0xf1   : > { %v379_v14 = vmul.f32 -1.442695, %v259_v12 }
  0xf2   : > { %454 = vpow2.f32 %v380_v13 }
  0xf3   : > { %456 = vpow2.f32 %v379_v14 }
  0xfc   : > { %v455_v15 = vpop.eup %454 }
  0xfd   : > { %v457_v16 = vpop.eup %456  ;;  %v274_v17 = vadd.f32 1.0, %v455_v15 }
  0xfe   : > { %v273_v18 = vadd.f32 1.0, %v457_v16 }
  0xff   : > { %458 = vrcp.f32 %v274_v17 }
 0x100   : > { %460 = vrcp.f32 %v273_v18 }
 0x109   : > { %v459_v20 = vpop.eup %458 }
 0x10a   : > { %v461_v21 = vpop.eup %460  ;;  %v280_v22 = vmul.f32 %v459_v20, %v264_v10 }
 0x10b   : > { %v279_v24 = vmul.f32 %v461_v21, %v259_v12 }
 0x10c   : > { %283 = vst.msk [vmem:[%s164_s25 + $0x8] sm:$0xff] %vm281_vm1, %v280_v22 }
 0x10d   : > { %282 = vst.msk [vmem:[%s164_s25] sm:$0xff] %vm281_vm1, %v279_v24 }
 0x10e   : > { %292 = vst.msk [vmem:[%s164_s25 + $0x8] sm:$0xff] %vm290_vm2, %v287_v23  ;;  %291 = vst.msk [vmem:[%s164_s25] sm:$0xff] %vm290_vm2, %v285_v19 }
 0x10f   : > { %475 = shalt.err (!%p472_p3)
}
 0x110   : > { %s476_s7 = scalar_lea.hbm %s622_s29, 256  ;;  %s480_s10 = scalar_lea.hbm %s670_s3, 1024 }
 0x111   : > { %p477_p4 = scmp.ne.s32.totalorder %s622_s29, %s476_s7  ;;  %p481_p9 = scmp.lt.u32.totalorder %s622_s29, %s670_s3 }
 0x112   : > { %p482_p10 = scmp.lt.u32.totalorder %s480_s10, %s476_s7  ;;  %p484_p12 = scmp.lt.u32.totalorder %s476_s7, %s622_s29 }
 0x113   : > { %p478_p7 = pnand %p477_p4, %p588_p5 }
 0x114   : > { %p483_p11 = por %p482_p10, %p481_p9 }
 0x115   : > { %p479_p8 = pneg %p478_p7 }
 0x116   : > { %p485_p13 = por %p484_p12, %p483_p11 }
 0x118   : > { %p486_p0 = pnand %p485_p13, %p479_p8 }
 0x11a   : > { %489 = shalt.err (!%p486_p0)
}
 0x11b   : > { %s528_s19 = smov 128   ;;  %s529_s20 = smov 8  }
 0x11c   : > { %412 = dma.vmem_to_hbm [thread:$0]  (%p588_p5), %s624_s26, 256, %s622_s29, %s626_s16, %s528_s19, %s528_s19, %s529_s20  }
 0x11d PF: > { %p418_p1 = scmp.ge.s32.totalorder %s524_s15, 2  ;;  %s322_s24 = sand.u32 1, %s512_s12  }
 0x11e   : > { %s323_s25 = scalar_lea.sflag [#allocation3], %s322_s24 }
 0x11f   : > { %p415_p2 = pnand %p418_p1, %p592_p6 }
 0x121   : > { %507 = dma.done.wait (!%p415_p2), %s323_s25, 256  }
 0x122   : > { %509 = vsyncadd (!%p415_p2), %s323_s25, 4294967040  ;;  %p13_p3 = scmp.ge.s32.totalorder %s575_s18, 6   ;;  %s673_s12 = smov %s516_s13 }
 0x123   : > { %s674_s13 = smov %s520_s14  ;;  %s675_s14 = smov %s586_s21 }
 0x124   : > { %s676_s15 = smov %s575_s18  ;;  %15 = sbr.rel (!%p13_p3) target bundleno = 3 (0x3), region = 67 }
 0x12b   :  { %328 = vsyncpa [#allocation3], 1 }
 0x12c   :  { %330 = vsyncpa [#allocation3 + $0x1], 1 }

</bundles_post_ra>
